<compile_context>
chip_gen: v7x
topology: tpu7x:2x2x1
jax: 0.10.0
libtpu: 0.0.40
codegen_flags: <defaults>
</compile_context>

<pallas_src>
import numpy as np
import jax
import jax.numpy as jnp
from jax import lax
from jax.experimental import pallas as pl
from jax.experimental.pallas import tpu as pltpu

EPS = 1e-5
GROUPS = 16


def resblock_kernel(x_ref, wcat_ref, bcat_ref, w2_ref, b2_ref, w3_ref, b3_ref,
                    mfirst_ref, mlast_ref, o_ref):
    x = x_ref[0]                                   # (Cin, L)
    cmid = w2_ref.shape[1]
    L = x.shape[1]

    # ---- fused conv1 (1x1) + shortcut conv (1x1); BN scales folded into W ----
    hcat = jnp.dot(wcat_ref[...], x, preferred_element_type=jnp.float32)
    hcat = hcat + bcat_ref[...]                    # (Cmid + Cout, L)
    h1 = jnp.maximum(hcat[:cmid, :], 0.0)          # conv1 + BN1 + ReLU  (Cmid, L)
    sc = hcat[cmid:, :]                            # shortcut + BNsc     (Cout, L)

    # ---- depthwise k=3 conv (groups == Cmid) + BN2 + ReLU, on the VPU ----
    # out[c, l] = w0[c]*h1[c, l-1] + w1[c]*h1[c, l] + w2[c]*h1[c, l+1]
    prev = pltpu.roll(h1, shift=1, axis=1) * mfirst_ref[...]      # zero col 0
    nxt = pltpu.roll(h1, shift=L - 1, axis=1) * mlast_ref[...]    # zero col L-1
    h2 = prev * w2_ref[0] + h1 * w2_ref[1] + nxt * w2_ref[2] + b2_ref[...]
    h2 = jnp.maximum(h2, 0.0)                      # (Cmid, L)

    # ---- conv3 (1x1) + BN3 (scale folded), residual add, final ReLU ----
    h3 = jnp.dot(w3_ref[...], h2, preferred_element_type=jnp.float32)
    h3 = h3 + b3_ref[...]                          # (Cout, L)
    o_ref[0] = jnp.maximum(h3 + sc, 0.0)


def resblock_forward(x_ncl, p):
    """x_ncl: (B, Cin, L) float32 (PyTorch NCL layout). Returns (B, Cout, L)."""
    B, Cin, L = x_ncl.shape
    Cmid = p["w2_taps"].shape[1]
    Cout = p["w3"].shape[0]
    assert L % 128 == 0, "L must be a multiple of 128 for lane-dense blocks"

    def full(shape):
        n = len(shape)
        return pl.BlockSpec(shape, lambda b, _n=n: (0,) * _n)

    return pl.pallas_call(
        resblock_kernel,
        out_shape=jax.ShapeDtypeStruct((B, Cout, L), jnp.float32),
        grid=(B,),
        in_specs=[
            pl.BlockSpec((1, Cin, L), lambda b: (b, 0, 0)),
            full((Cmid + Cout, Cin)), full((Cmid + Cout, 1)),
            full((3, Cmid, 1)), full((Cmid, 1)),
            full((Cout, Cmid)), full((Cout, 1)),
            full((1, L)), full((1, L)),
        ],
        out_specs=pl.BlockSpec((1, Cout, L), lambda b: (b, 0, 0)),
        compiler_params=pltpu.CompilerParams(dimension_semantics=("parallel",)),
    )(x_ncl, p["wcat"], p["bcat"], p["w2_taps"], p["b2"], p["w3"], p["b3"],
      p["m_first"], p["m_last"])


# --------------------------- parameter setup ---------------------------------

def bn_fold(gamma, beta, mean, var):
    s = gamma / np.sqrt(var + EPS)
    return s.astype(np.float32), (beta - mean * s).astype(np.float32)


def make_params(key, in_ch, out_ch, length):
    mid = out_ch // 4
    assert mid % GROUPS == 0
    # TODO(synk): grouped conv with >1 channel per group (mid > GROUPS) would
    #             need a block-diagonal matmul form; tested config is depthwise.
    assert mid == GROUPS, "depthwise fast path requires out_ch // 4 == groups"
    assert mid % 8 == 0            # sublane-aligned split of fused conv1/shortcut

    ks = jax.random.split(key, 8)
    rnd = lambda k, shape: np.asarray(jax.random.normal(k, shape), np.float32) * 0.1

    # Torch-layout conv weights
    w1_t = rnd(ks[0], (mid, in_ch, 1))              # Conv1d(in_ch, mid, 1)
    w2_t = rnd(ks[1], (mid, mid // GROUPS, 3))      # Conv1d(mid, mid, 3, groups=16)
    w3_t = rnd(ks[2], (out_ch, mid, 1))             # Conv1d(mid, out_ch, 1)
    wsc_t = rnd(ks[3], (out_ch, in_ch, 1))          # shortcut Conv1d(in_ch, out_ch, 1)

    def bn_params(k, c):
        a, b, c_, d = jax.random.split(k, 4)
        gamma = 1.0 + 0.1 * np.asarray(jax.random.normal(a, (c,)), np.float32)
        beta = 0.1 * np.asarray(jax.random.normal(b, (c,)), np.float32)
        mean = 0.1 * np.asarray(jax.random.normal(c_, (c,)), np.float32)
        var = 1.0 + 0.1 * np.abs(np.asarray(jax.random.normal(d, (c,)), np.float32))
        return gamma, beta, mean, var

    bn1, bn2, bn3, bnsc = (bn_params(ks[4], mid), bn_params(ks[5], mid),
                           bn_params(ks[6], out_ch), bn_params(ks[7], out_ch))
    s1, b1 = bn_fold(*bn1)
    s2, b2 = bn_fold(*bn2)
    s3, b3 = bn_fold(*bn3)
    ssc, bsc = bn_fold(*bnsc)

    # Fold BN scales into the conv weights; keep only the per-channel shift.
    w1 = w1_t[:, :, 0] * s1[:, None]                         # (mid, in_ch)
    wsc = wsc_t[:, :, 0] * ssc[:, None]                      # (out_ch, in_ch)
    w3 = w3_t[:, :, 0] * s3[:, None]                         # (out_ch, mid)
    w2_taps = (w2_t[:, 0, :].T * s2[None, :])[:, :, None]    # (3, mid, 1)

    # Fuse conv1 + shortcut into a single matmul over x.
    wcat = np.concatenate([w1, wsc], axis=0)                 # (mid + out_ch, in_ch)
    bcat = np.concatenate([b1, bsc], axis=0)[:, None]        # (mid + out_ch, 1)

    # Boundary masks for the depthwise conv (zero the wrapped roll column).
    m_first = np.ones((1, length), np.float32)
    m_first[0, 0] = 0.0
    m_last = np.ones((1, length), np.float32)
    m_last[0, length - 1] = 0.0

    params = {
        "wcat": jnp.asarray(wcat), "bcat": jnp.asarray(bcat),
        "w2_taps": jnp.asarray(w2_taps), "b2": jnp.asarray(b2[:, None]),
        "w3": jnp.asarray(w3), "b3": jnp.asarray(b3[:, None]),
        "m_first": jnp.asarray(m_first), "m_last": jnp.asarray(m_last),
    }
    torch_like = dict(w1=jnp.asarray(w1_t), w2=jnp.asarray(w2_t),
                      w3=jnp.asarray(w3_t), wsc=jnp.asarray(wsc_t),
                      bn1=bn1, bn2=bn2, bn3=bn3, bnsc=bnsc)
    return params, torch_like


# --------------------- pure-JAX reference (PyTorch semantics, NCL) -----------

def _conv1d(x_ncl, w, stride=1, padding=0, groups=1):
    return lax.conv_general_dilated(
        x_ncl, w, window_strides=(stride,), padding=[(padding, padding)],
        dimension_numbers=("NCH", "OIH", "NCH"), feature_group_count=groups)


def _bn(x_ncl, gamma, beta, mean, var):
    g = jnp.asarray(gamma); b = jnp.asarray(beta)
    m = jnp.asarray(mean); v = jnp.asarray(var)
    s = g / jnp.sqrt(v + EPS)
    return x_ncl * s[None, :, None] + (b - m * s)[None, :, None]


def ref_forward_ncl(x_ncl, t):
    h = jax.nn.relu(_bn(_conv1d(x_ncl, t["w1"]), *t["bn1"]))
    h = jax.nn.relu(_bn(_conv1d(h, t["w2"], padding=1, groups=GROUPS), *t["bn2"]))
    h = _bn(_conv1d(h, t["w3"]), *t["bn3"])
    sc = _bn(_conv1d(x_ncl, t["wsc"]), *t["bnsc"])
    return jax.nn.relu(h + sc)


# ------------------------------------ main ------------------------------------

if __name__ == "__main__":
    B, IN_CH, OUT_CH, L = 2, 32, 64, 128   # out_ch//4 = 16 == groups -> depthwise
    key = jax.random.PRNGKey(0)
    kx, kp = jax.random.split(key)

    x_ncl = jax.random.normal(kx, (B, IN_CH, L), dtype=jnp.float32)  # PyTorch NCL
    params, torch_like = make_params(kp, IN_CH, OUT_CH, L)

    out_ncl = jax.block_until_ready(resblock_forward(x_ncl, params))

    ref = jax.block_until_ready(ref_forward_ncl(x_ncl, torch_like))
    np.testing.assert_allclose(np.asarray(out_ncl), np.asarray(ref),
                               rtol=1e-4, atol=1e-4)
    print("KERNEL_OK")
</pallas_src>

<mosaic_0001>
module attributes {stable_mosaic.version = 11 : i64} {
  func.func @resblock_kernel(%arg0: i32, %arg1: memref<1x32x128xf32, #tpu.memory_space<vmem>>, %arg2: memref<80x32xf32, #tpu.memory_space<vmem>>, %arg3: memref<80x1xf32, #tpu.memory_space<vmem>>, %arg4: memref<3x16x1xf32, #tpu.memory_space<vmem>>, %arg5: memref<16x1xf32, #tpu.memory_space<vmem>>, %arg6: memref<64x16xf32, #tpu.memory_space<vmem>>, %arg7: memref<64x1xf32, #tpu.memory_space<vmem>>, %arg8: memref<1x128xf32, #tpu.memory_space<vmem>>, %arg9: memref<1x128xf32, #tpu.memory_space<vmem>>, %arg10: memref<1x64x128xf32, #tpu.memory_space<vmem>>) attributes {dimension_semantics = [#tpu.dimension_semantics<parallel>], iteration_bounds = array<i64: 2>, scalar_prefetch = 0 : i64, scratch_operands = 0 : i64, tpu.core_type = #tpu.core_type<tc>, window_params = [{transform_indices = @transform_0, window_bounds = array<i64: 1, 32, 128>}, {pipeline_mode = #tpu.pipeline_mode<synchronous>, transform_indices = @transform_1, window_bounds = array<i64: 80, 32>}, {pipeline_mode = #tpu.pipeline_mode<synchronous>, transform_indices = @transform_2, window_bounds = array<i64: 80, 1>}, {pipeline_mode = #tpu.pipeline_mode<synchronous>, transform_indices = @transform_3, window_bounds = array<i64: 3, 16, 1>}, {pipeline_mode = #tpu.pipeline_mode<synchronous>, transform_indices = @transform_4, window_bounds = array<i64: 16, 1>}, {pipeline_mode = #tpu.pipeline_mode<synchronous>, transform_indices = @transform_5, window_bounds = array<i64: 64, 16>}, {pipeline_mode = #tpu.pipeline_mode<synchronous>, transform_indices = @transform_6, window_bounds = array<i64: 64, 1>}, {pipeline_mode = #tpu.pipeline_mode<synchronous>, transform_indices = @transform_7, window_bounds = array<i64: 1, 128>}, {pipeline_mode = #tpu.pipeline_mode<synchronous>, transform_indices = @transform_8, window_bounds = array<i64: 1, 128>}, {transform_indices = @transform_9, window_bounds = array<i64: 1, 64, 128>}]} {
    %c0 = arith.constant 0 : index
    %c0_0 = arith.constant 0 : index
    %c0_1 = arith.constant 0 : index
    %0 = vector.load %arg1[%c0, %c0_0, %c0_1] : memref<1x32x128xf32, #tpu.memory_space<vmem>>, vector<1x32x128xf32>
    %1 = vector.shape_cast %0 : vector<1x32x128xf32> to vector<32x128xf32>
    %c0_2 = arith.constant 0 : index
    %c0_3 = arith.constant 0 : index
    %2 = vector.load %arg2[%c0_2, %c0_3] : memref<80x32xf32, #tpu.memory_space<vmem>>, vector<80x32xf32>
    %cst = arith.constant dense<0.000000e+00> : vector<80x128xf32>
    %3 = tpu.matmul %2, %1, %cst {dimension_numbers = #tpu.dot_dimension_numbers<[1], [0], [0], [1], [0, 0, 1, 1], [], []>} : vector<80x32xf32>, vector<32x128xf32>, vector<80x128xf32> -> vector<80x128xf32>
    %c0_4 = arith.constant 0 : index
    %c0_5 = arith.constant 0 : index
    %4 = vector.load %arg3[%c0_4, %c0_5] : memref<80x1xf32, #tpu.memory_space<vmem>>, vector<80x1xf32>
    %5 = vector.broadcast %4 : vector<80x1xf32> to vector<80x128xf32>
    %6 = arith.addf %3, %5 : vector<80x128xf32>
    %7 = vector.extract_strided_slice %6 {offsets = [0, 0], sizes = [16, 128], strides = [1, 1]} : vector<80x128xf32> to vector<16x128xf32>
    %cst_6 = arith.constant 0.000000e+00 : f32
    %8 = vector.broadcast %cst_6 : f32 to vector<16x128xf32>
    %9 = arith.maximumf %7, %8 : vector<16x128xf32>
    %10 = vector.extract_strided_slice %6 {offsets = [16, 0], sizes = [64, 128], strides = [1, 1]} : vector<80x128xf32> to vector<64x128xf32>
    %c1_i32 = arith.constant 1 : i32
    %11 = tpu.dynamic_rotate %9 by %c1_i32 dim 1 : vector<16x128xf32>, i32 -> vector<16x128xf32>
    %c0_7 = arith.constant 0 : index
    %c0_8 = arith.constant 0 : index
    %12 = vector.load %arg8[%c0_7, %c0_8] : memref<1x128xf32, #tpu.memory_space<vmem>>, vector<1x128xf32>
    %13 = vector.broadcast %12 : vector<1x128xf32> to vector<16x128xf32>
    %14 = arith.mulf %11, %13 : vector<16x128xf32>
    %c127_i32 = arith.constant 127 : i32
    %15 = tpu.dynamic_rotate %9 by %c127_i32 dim 1 : vector<16x128xf32>, i32 -> vector<16x128xf32>
    %c0_9 = arith.constant 0 : index
    %c0_10 = arith.constant 0 : index
    %16 = vector.load %arg9[%c0_9, %c0_10] : memref<1x128xf32, #tpu.memory_space<vmem>>, vector<1x128xf32>
    %17 = vector.broadcast %16 : vector<1x128xf32> to vector<16x128xf32>
    %18 = arith.mulf %15, %17 : vector<16x128xf32>
    %c0_11 = arith.constant 0 : index
    %c0_12 = arith.constant 0 : index
    %c0_13 = arith.constant 0 : index
    %19 = vector.load %arg4[%c0_11, %c0_12, %c0_13] : memref<3x16x1xf32, #tpu.memory_space<vmem>>, vector<1x16x1xf32>
    %20 = vector.shape_cast %19 : vector<1x16x1xf32> to vector<16x1xf32>
    %21 = vector.broadcast %20 : vector<16x1xf32> to vector<16x128xf32>
    %22 = arith.mulf %14, %21 : vector<16x128xf32>
    %c1 = arith.constant 1 : index
    %c0_14 = arith.constant 0 : index
    %c0_15 = arith.constant 0 : index
    %23 = vector.load %arg4[%c1, %c0_14, %c0_15] : memref<3x16x1xf32, #tpu.memory_space<vmem>>, vector<1x16x1xf32>
    %24 = vector.shape_cast %23 : vector<1x16x1xf32> to vector<16x1xf32>
    %25 = vector.broadcast %24 : vector<16x1xf32> to vector<16x128xf32>
    %26 = arith.mulf %9, %25 : vector<16x128xf32>
    %27 = arith.addf %22, %26 : vector<16x128xf32>
    %c2 = arith.constant 2 : index
    %c0_16 = arith.constant 0 : index
    %c0_17 = arith.constant 0 : index
    %28 = vector.load %arg4[%c2, %c0_16, %c0_17] : memref<3x16x1xf32, #tpu.memory_space<vmem>>, vector<1x16x1xf32>
    %29 = vector.shape_cast %28 : vector<1x16x1xf32> to vector<16x1xf32>
    %30 = vector.broadcast %29 : vector<16x1xf32> to vector<16x128xf32>
    %31 = arith.mulf %18, %30 : vector<16x128xf32>
    %32 = arith.addf %27, %31 : vector<16x128xf32>
    %c0_18 = arith.constant 0 : index
    %c0_19 = arith.constant 0 : index
    %33 = vector.load %arg5[%c0_18, %c0_19] : memref<16x1xf32, #tpu.memory_space<vmem>>, vector<16x1xf32>
    %34 = vector.broadcast %33 : vector<16x1xf32> to vector<16x128xf32>
    %35 = arith.addf %32, %34 : vector<16x128xf32>
    %cst_20 = arith.constant 0.000000e+00 : f32
    %36 = vector.broadcast %cst_20 : f32 to vector<16x128xf32>
    %37 = arith.maximumf %35, %36 : vector<16x128xf32>
    %c0_21 = arith.constant 0 : index
    %c0_22 = arith.constant 0 : index
    %38 = vector.load %arg6[%c0_21, %c0_22] : memref<64x16xf32, #tpu.memory_space<vmem>>, vector<64x16xf32>
    %cst_23 = arith.constant dense<0.000000e+00> : vector<64x128xf32>
    %39 = tpu.matmul %38, %37, %cst_23 {dimension_numbers = #tpu.dot_dimension_numbers<[1], [0], [0], [1], [0, 0, 1, 1], [], []>} : vector<64x16xf32>, vector<16x128xf32>, vector<64x128xf32> -> vector<64x128xf32>
    %c0_24 = arith.constant 0 : index
    %c0_25 = arith.constant 0 : index
    %40 = vector.load %arg7[%c0_24, %c0_25] : memref<64x1xf32, #tpu.memory_space<vmem>>, vector<64x1xf32>
    %41 = vector.broadcast %40 : vector<64x1xf32> to vector<64x128xf32>
    %42 = arith.addf %39, %41 : vector<64x128xf32>
    %43 = arith.addf %42, %10 : vector<64x128xf32>
    %cst_26 = arith.constant 0.000000e+00 : f32
    %44 = vector.broadcast %cst_26 : f32 to vector<64x128xf32>
    %45 = arith.maximumf %43, %44 : vector<64x128xf32>
    %c0_27 = arith.constant 0 : index
    %c0_28 = arith.constant 0 : index
    %c0_29 = arith.constant 0 : index
    %46 = vector.load %arg10[%c0_27, %c0_28, %c0_29] : memref<1x64x128xf32, #tpu.memory_space<vmem>>, vector<1x64x128xf32>
    %47 = vector.shape_cast %46 : vector<1x64x128xf32> to vector<64x128xf32>
    %48 = vector.shape_cast %45 : vector<64x128xf32> to vector<1x64x128xf32>
    tpu.vector_store %arg10[%c0_27, %c0_28, %c0_29], %48 {strides = array<i32>} : memref<1x64x128xf32, #tpu.memory_space<vmem>>, vector<1x64x128xf32>,
    return
  }
  func.func @transform_0(%arg0: i32) -> (i32, i32, i32) {
    %c0_i32 = arith.constant 0 : i32
    %c0_i32_0 = arith.constant 0 : i32
    %c0_i32_1 = arith.constant 0 : i32
    return %arg0, %c0_i32, %c0_i32_0 : i32, i32, i32
  }
  func.func @transform_1(%arg0: i32) -> (i32, i32) {
    %c0_i32 = arith.constant 0 : i32
    %c0_i32_0 = arith.constant 0 : i32
    %c0_i32_1 = arith.constant 0 : i32
    return %c0_i32, %c0_i32_0 : i32, i32
  }
  func.func @transform_2(%arg0: i32) -> (i32, i32) {
    %c0_i32 = arith.constant 0 : i32
    %c0_i32_0 = arith.constant 0 : i32
    %c0_i32_1 = arith.constant 0 : i32
    return %c0_i32, %c0_i32_0 : i32, i32
  }
  func.func @transform_3(%arg0: i32) -> (i32, i32, i32) {
    %c0_i32 = arith.constant 0 : i32
    %c0_i32_0 = arith.constant 0 : i32
    %c0_i32_1 = arith.constant 0 : i32
    %c0_i32_2 = arith.constant 0 : i32
    return %c0_i32, %c0_i32_0, %c0_i32_1 : i32, i32, i32
  }
  func.func @transform_4(%arg0: i32) -> (i32, i32) {
    %c0_i32 = arith.constant 0 : i32
    %c0_i32_0 = arith.constant 0 : i32
    %c0_i32_1 = arith.constant 0 : i32
    return %c0_i32, %c0_i32_0 : i32, i32
  }
  func.func @transform_5(%arg0: i32) -> (i32, i32) {
    %c0_i32 = arith.constant 0 : i32
    %c0_i32_0 = arith.constant 0 : i32
    %c0_i32_1 = arith.constant 0 : i32
    return %c0_i32, %c0_i32_0 : i32, i32
  }
  func.func @transform_6(%arg0: i32) -> (i32, i32) {
    %c0_i32 = arith.constant 0 : i32
    %c0_i32_0 = arith.constant 0 : i32
    %c0_i32_1 = arith.constant 0 : i32
    return %c0_i32, %c0_i32_0 : i32, i32
  }
  func.func @transform_7(%arg0: i32) -> (i32, i32) {
    %c0_i32 = arith.constant 0 : i32
    %c0_i32_0 = arith.constant 0 : i32
    %c0_i32_1 = arith.constant 0 : i32
    return %c0_i32, %c0_i32_0 : i32, i32
  }
  func.func @transform_8(%arg0: i32) -> (i32, i32) {
    %c0_i32 = arith.constant 0 : i32
    %c0_i32_0 = arith.constant 0 : i32
    %c0_i32_1 = arith.constant 0 : i32
    return %c0_i32, %c0_i32_0 : i32, i32
  }
  func.func @transform_9(%arg0: i32) -> (i32, i32, i32) {
    %c0_i32 = arith.constant 0 : i32
    %c0_i32_0 = arith.constant 0 : i32
    %c0_i32_1 = arith.constant 0 : i32
    return %arg0, %c0_i32, %c0_i32_0 : i32, i32, i32
  }
}

</mosaic_0001>

<bundles_post_ra>
// kernel: tpu_custom_call.1
= control target key start
LH: loop header
LB: loop body
LE: loop exit
PB: predicated region body
PF: predicated region fallthrough
CT: control target
= control target key end

     0   :  { %14 = vsyncpa [#allocation3], 0  ;;  %s1540_s0 = inlined_call_operand.vmem [shape: f32[2,32,128], index: 0, kind: input, shape index: {}]   ;;  %s1541_s1 = inlined_call_operand.vmem [shape: f32[80,32], index: 1, kind: input, shape index: {}]   ;;  %s1542_s2 = inlined_call_operand.vmem [shape: f32[80,1], index: 2, kind: input, shape index: {}]   ;;  %s1543_s3 = inlined_call_operand.vmem [shape: f32[3,16,1], index: 3, kind: input, shape index: {}]   ;;  %s1544_s4 = inlined_call_operand.vmem [shape: f32[16,1], index: 4, kind: input, shape index: {}]   ;;  %s1545_s5 = inlined_call_operand.vmem [shape: f32[64,16], index: 5, kind: input, shape index: {}]   ;;  %s1546_s6 = inlined_call_operand.vmem [shape: f32[64,1], index: 6, kind: input, shape index: {}]   ;;  %s1547_s7 = inlined_call_operand.vmem [shape: f32[1,128], index: 7, kind: input, shape index: {}]   ;;  %s1548_s8 = inlined_call_operand.vmem [shape: f32[1,128], index: 8, kind: input, shape index: {}]   ;;  %s1549_s9 = inlined_call_operand.hbm [shape: f32[2,64,128], index: 9, kind: output, shape index: {}]  }
   0x1   :  { %16 = vsyncpa [#allocation3 + $0x1], 0  ;;  %s1232_s30 = smov 0   ;;  %s1234_s10 = smov 0  }
   0x2   :  { %s1236_s11 = smov 0   ;;  %s1238_s12 = smov 0  }
   0x3 LB: > { %s1253_s13 = sadd.s32 4294967295, %s1174_s12   ;;  %s929_s14 = sadd.s32 4294967294, %s1174_s12   ;;  %s1174_s12 = sphi %s1238_s12, %s1555_s12   ;;  %s1170_s11 = sphi %s1236_s11, %s1554_s11   ;;  %s1166_s10 = sphi %s1234_s10, %s1553_s10   ;;  %s1162_s30 = sphi %s1232_s30, %s1552_s30  }
   0x4   : > { %s1257_s15 = sadd.s32 1, %s1174_s12   ;;  %s223_s16 = sadd.s32 1, %s1170_s11 }
   0x5   : > { %s220_s17 = ssub.s32 %s1174_s12, %s1257_s15  ;;  %p233_p0 = scmp.ne.s32.totalorder %s1170_s11, %s1166_s10 }
   0x6   : > { %p221_p1 = scmp.eq.s32.totalorder %s220_s17, 0  ;;  %p234_p2 = scmp.eq.s32.totalorder %s1253_s13, 1 }
   0x7   : > { %p239_p3 = scmp.ne.s32.totalorder %s1166_s10, %s1162_s30  ;;  %p240_p4 = scmp.eq.s32.totalorder %s929_s14, 1 }
   0x8   : > { %s1268_s18 = scalar_select %p221_p1, %s1170_s11, %s223_s16  }
   0x9   : > { %p1270_p5 = por %p234_p2, %p233_p0  ;;  %p1274_p6 = por %p240_p4, %p239_p3 }
   0xa   : > { %p932_p7 = scmp.ge.s32.totalorder %s1174_s12, 1  ;;  %p290_p8 = scmp.lt.s32.totalorder %s1174_s12, 3 }
   0xc   : > { %p291_p9 = pnand %p932_p7, %p290_p8 }
   0xd   : > { %p326_p10 = scmp.lt.s32.totalorder (!%p291_p9), %s1253_s13, 1  ;;  %v335_v0 = vld [vmem:[%s1541_s1] sm:$0xff] (!%p291_p9)  ;;  %vm405_vm0 = vcmask (!%p291_p9), 261120   ;;  %v1176_v2 = vmov (!%p291_p9), 0   ;;  %v346_v4 = vld [vmem:[%s1542_s2 + $0x8] sm:$0xff] (!%p291_p9)  ;;  %v948_v11 = vld [vmem:[%s1543_s3 + $0x10] sm:$0xff] (!%p291_p9) }
   0xe   : > { %294 = sbr.rel (%p291_p9) target bundleno = 632 (0x278), region = 56  ;;  %v345_v1 = vld [vmem:[%s1542_s2] sm:$0xff] (!%p291_p9)  ;;  %999 = vmatprep.mubr.msk.f32.mxu1 (!%p291_p9), %vm405_vm0, %v335_v0  ;;  %1110 = vset.pattern.permute.xlu0 (!%p291_p9), %v1176_v2  ;;  %v580_v5 = vld [vmem:[%s1543_s3 + $0x8] sm:$0xff] (!%p291_p9)  ;;  %v949_v13 = vld [vmem:[%s1543_s3 + $0x18] sm:$0xff] (!%p291_p9)  ;;  %s1178_s16 = smov (!%p291_p9), 127   ;;  %vm699_vm1 = vcmask (!%p291_p9), 130048  }
   0xf   : > { %357 = vperm.xlu0 (!%p291_p9), %1110, %v345_v1   ;;  %1111 = vset.pattern.permute.xlu1 (!%p291_p9), %v1176_v2  ;;  %v579_v3 = vld [vmem:[%s1543_s3] sm:$0xff] (!%p291_p9)  ;;  %v951_v15 = vld [vmem:[%s1543_s3 + $0x28] sm:$0xff] (!%p291_p9)  ;;  %v337_v18 = vld [vmem:[%s1541_s1 + $0x10] sm:$0xff] (!%p291_p9)  ;;  %s323_s24 = sand.u32 (!%p291_p9), 1, %s1166_s10   ;;  %s966_s27 = sshll.u32 (!%p291_p9), %s1253_s13, 10 }
  0x10   : > { %583 = vperm.xlu1 (!%p291_p9), %1111, %v579_v3   ;;  %v950_v14 = vld [vmem:[%s1543_s3 + $0x20] sm:$0xff] (!%p291_p9)  ;;  %v336_v16 = vld [vmem:[%s1541_s1 + $0x8] sm:$0xff] (!%p291_p9)  ;;  %v338_v20 = vld [vmem:[%s1541_s1 + $0x18] sm:$0xff] (!%p291_p9)  ;;  %s933_s26 = sshll.u32 (!%p291_p9), %s323_s24, 6  ;;  %s1179_s21 = smov (!%p291_p9), [#allocation2]  }
  0x11   : > { %v627_v17 = vld [vmem:[%s1544_s4] sm:$0xff] (!%p291_p9)  ;;  %v628_v19 = vld [vmem:[%s1544_s4 + $0x8] sm:$0xff] (!%p291_p9)  ;;  %v341_v23 = vld [vmem:[%s1541_s1 + $0x30] sm:$0xff] (!%p291_p9)  ;;  %s1116_s22 = sshll.u32 (!%p291_p9), %s1179_s21, 4  ;;  %s1117_s22 = int_to_ptr.vmem [resolvable:$false] %s1116_s22 }
  0x12   : > { %v339_v21 = vld [vmem:[%s1541_s1 + $0x20] sm:$0xff] (!%p291_p9)  ;;  %v340_v22 = vld [vmem:[%s1541_s1 + $0x28] sm:$0xff] (!%p291_p9)  ;;  %v342_v24 = vld [vmem:[%s1541_s1 + $0x38] sm:$0xff] (!%p291_p9) }
  0x13   : > { %362 = vperm.xlu0 (!%p291_p9), %1110, %v346_v4   ;;  %v343_v25 = vld [vmem:[%s1541_s1 + $0x40] sm:$0xff] (!%p291_p9)  ;;  %v344_v26 = vld [vmem:[%s1541_s1 + $0x48] sm:$0xff] (!%p291_p9)  ;;  %v348_v35 = vld [vmem:[%s1542_s2 + $0x18] sm:$0xff] (!%p291_p9) }
  0x14   : > { %588 = vperm.xlu1 (!%p291_p9), %1111, %v580_v5   ;;  %v643_v36 = vld [vmem:[%s1545_s5] sm:$0xff] (!%p291_p9)  ;;  %v347_v37 = vld [vmem:[%s1542_s2 + $0x10] sm:$0xff] (!%p291_p9)  ;;  %v350_v40 = vld [vmem:[%s1542_s2 + $0x28] sm:$0xff] (!%p291_p9) }
  0x15   : > { %s327_s25 = scalar_select %p326_p10, %s1253_s13, 1  ;;  %1018 = vmatprep.mubr.msk.f32.mxu0 %vm699_vm1, %v643_v36  ;;  %v349_v41 = vld [vmem:[%s1542_s2 + $0x20] sm:$0xff]  ;;  %v352_v44 = vld [vmem:[%s1542_s2 + $0x38] sm:$0xff]  ;;  %v351_v45 = vld [vmem:[%s1542_s2 + $0x30] sm:$0xff] }
  0x16   : > { %v354_v48 = vld [vmem:[%s1542_s2 + $0x48] sm:$0xff]  ;;  %v353_v49 = vld [vmem:[%s1542_s2 + $0x40] sm:$0xff]  ;;  %v654_v54 = vld [vmem:[%s1546_s6 + $0x18] sm:$0xff]  ;;  %s1499_s13 = scalar_lea.sflag [#allocation3], %s323_s24 }
  0x17   : > { %s965_s14 = sshll.u32 %s327_s25, 5  ;;  %598 = vperm.xlu0 %1110, %v948_v11   ;;  %v652_v52 = vld [vmem:[%s1546_s6 + $0x8] sm:$0xff]  ;;  %v651_v53 = vld [vmem:[%s1546_s6] sm:$0xff]  ;;  %v653_v55 = vld [vmem:[%s1546_s6 + $0x10] sm:$0xff]  ;;  %s1475_s25 = scalar_lea.vmem [#allocation2], %s933_s26 }
  0x18   : > { %s330_s23 = scalar_lea.vmem %s1540_s0, %s965_s14  ;;  %603 = vperm.xlu1 %1111, %v949_v13   ;;  %s1177_s14 = smov 1   ;;  %v656_v56 = vld [vmem:[%s1546_s6 + $0x28] sm:$0xff]  ;;  %v655_v57 = vld [vmem:[%s1546_s6 + $0x20] sm:$0xff]  ;;  %v658_v58 = vld [vmem:[%s1546_s6 + $0x38] sm:$0xff] }
  0x19   : > { %v331_v6 = vld [vmem:[%s330_s23] sm:$0xff]  ;;  %v332_v7 = vld [vmem:[%s330_s23 + $0x8] sm:$0xff]  ;;  %v333_v8 = vld [vmem:[%s330_s23 + $0x10] sm:$0xff]  ;;  %s867_s28 = sshll.u32 %s1475_s25, 4  ;;  %s1493_s28 = int_to_ptr.vmem [resolvable:$true] %s867_s28 }
  0x1a   : > { %v1030_v9 = vpack.c.bf16 %v332_v7, %v331_v6  ;;  %v334_v10 = vld [vmem:[%s330_s23 + $0x18] sm:$0xff]  ;;  %v657_v59 = vld [vmem:[%s1546_s6 + $0x30] sm:$0xff]  ;;  %v946_v4 = vld [vmem:[%s1547_s7] ss:$0 sm:$0xff]  ;;  %s1112_s17 = scalar_lea.vmem %s1493_s28, 1024  ;;  %s1118_s23 = scalar_lea.vmem %s1117_s22, 2048 }
  0x1b   : > { %v1034_v12 = vpack.c.bf16 %v334_v10, %v333_v8  ;;  %615 = vperm.xlu0 %1110, %v950_v14   ;;  %p1113_p11 = scmp.ne.s32.totalorder %s1493_s28, %s1112_s17  ;;  %p1119_p0 = scmp.lt.s32.totalorder %s1493_s28, %s1117_s22 }
  0x1c   : > { %1031 = vmatprep.subr.bf16.mxu1 %v1030_v9  ;;  %620 = vperm.xlu1 %1111, %v951_v15   ;;  %p1120_p1 = scmp.lt.s32.totalorder %s1118_s23, %s1112_s17 }
  0x1d   : > { %1033 = vmatpush3.bf16.msra.mxu1 %v1030_v9  ;;  %v947_v9 = vld [vmem:[%s1548_s8] ss:$0 sm:$0xff]  ;;  %p1114_p12 = pnand %p1113_p11, %p1270_p5 }
  0x1e   : > { %1035 = vmatprep.subr.bf16.mxu1 %v1034_v12  ;;  %p1121_p2 = por %p1120_p1, %p1119_p0 }
  0x1f   : > { %631 = vperm.xlu0 %1110, %v627_v17   ;;  %p1115_p13 = pneg %p1114_p12 }
  0x20   : > { %636 = vperm.xlu1 %1111, %v628_v19  }
  0x21   : > { %1037 = vmatpush3.bf16.msra.mxu1 %v1034_v12  ;;  %p1122_p3 = pnand %p1121_p2, %p1115_p13 }
  0x24   : > { %1000 = vmatmul.mubr.msk.f32.vlgmr.msra.gmra.mrb[0].mxu1 %vm405_vm0, %v336_v16 }
  0x25   : > { %1002 = vmatprep.mubr.msk.f32.mxu1 %vm405_vm0, %v337_v18 }
  0x28   : > { %1003 = vmatmul.mubr.msk.f32.gmra.mrb[2].mxu1 %vm405_vm0, %v338_v20 }
  0x29   : > { %1005 = vmatprep.mubr.msk.f32.mxu1 %vm405_vm0, %v339_v21 }
  0x2c   : > { %1006 = vmatmul.mubr.msk.f32.gmra.mrb[4].mxu1 %vm405_vm0, %v340_v22 }
  0x2d   : > { %1008 = vmatprep.mubr.msk.f32.mxu1 %vm405_vm0, %v341_v23 }
  0x30   : > { %1009 = vmatmul.mubr.msk.f32.gmra.mrb[6].mxu1 %vm405_vm0, %v342_v24 }
  0x31   : > { %1011 = vmatprep.mubr.msk.f32.mxu1 %vm405_vm0, %v343_v25 }
  0x34   : > { %1012 = vmatmul.mubr.msk.f32.gmra.mrb[8].mxu1 %vm405_vm0, %v344_v26 }
  0x8e   : > { %v358_v27 = vpop.permute.xlu0 %357 }
  0x8f   : > { %v584_v60 = vpop.permute.xlu1 %583 }
  0x92   : > { %v363_v28 = vpop.permute.xlu0 %362 }
  0x93   : > { %v589_v61 = vpop.permute.xlu1 %588 }
  0x96   : > { %v599_v62 = vpop.permute.xlu0 %598 }
  0x97   : > { %v604_v63 = vpop.permute.xlu1 %603 }
  0x9a   : > { %v616_v1 = vpop.permute.xlu0 %615 }
  0x9b   : > { %v621_v0 = vpop.permute.xlu1 %620 }
  0x9e   : > { %v632_v3 = vpop.permute.xlu0 %631 }
  0x9f   : > { %v637_v2 = vpop.permute.xlu1 %636 }
  0xf7   : > { %v1001_v29 = vpop.f32.mrb[0].mxu1 }
  0xf8   : > { %v508_v30 = vadd.f32 %v1001_v29, %v363_v28  ;;  %v502_v31 = vpop.f32.mrb[1].mxu1  ;;  %v644_v29 = vld [vmem:[%s1545_s5 + $0x8] sm:$0xff] }
  0xf9   : > { %v503_v32 = vadd.f32 %v502_v31, %v358_v27  ;;  %v646_v31 = vld [vmem:[%s1545_s5 + $0x18] sm:$0xff] }
  0xfa   : > { %v1355_v33 = vmax.f32 %v508_v30, 0.0  ;;  %v645_v30 = vld [vmem:[%s1545_s5 + $0x10] sm:$0xff] }
  0xfb   : > { %v1357_v34 = vmax.f32 %v503_v32, 0.0  ;;  %v1373_v38 = vpop.f32.mrb[2].mxu1  ;;  %v647_v32 = vld [vmem:[%s1545_s5 + $0x20] sm:$0xff] }
  0xfc   : > { %555 = vrot.lane.b32.xlu1 %v1355_v33, %s1177_s14  ;;  %v1375_v39 = vpop.f32.mrb[3].mxu1  ;;  %v607_v13 = vmul.f32 %v604_v63, %v1355_v33 }
  0xfd   : > { %553 = vrot.lane.b32.xlu0 %v1357_v34, %s1177_s14  ;;  %v606_v16 = vmul.f32 %v599_v62, %v1357_v34 }
  0xff   : > { %v1383_v42 = vpop.f32.mrb[4].mxu1 }
 0x100   : > { %568 = vrot.lane.b32.xlu1 %v1355_v33, %s1178_s16  ;;  %v1385_v43 = vpop.f32.mrb[5].mxu1  ;;  %v648_v33 = vld [vmem:[%s1545_s5 + $0x28] sm:$0xff] }
 0x101   : > { %566 = vrot.lane.b32.xlu0 %v1357_v34, %s1178_s16  ;;  %v649_v34 = vld [vmem:[%s1545_s5 + $0x30] sm:$0xff]  ;;  %s1491_s16 = scalar_lea.hbm %s1549_s9, %s966_s27 }
 0x103   : > { %v1393_v46 = vpop.f32.mrb[6].mxu1 }
 0x104   : > { %372 = vperm.xlu1 %1111, %v348_v35   ;;  %v1395_v47 = vpop.f32.mrb[7].mxu1  ;;  %v650_v35 = vld [vmem:[%s1545_s5 + $0x38] sm:$0xff] }
 0x105   : > { %367 = vperm.xlu0 %1110, %v347_v37  }
 0x107   : > { %v1403_v50 = vpop.f32.mrb[8].mxu1 }
 0x108   : > { %382 = vperm.xlu1 %1111, %v350_v40   ;;  %v1405_v51 = vpop.f32.mrb[9].mxu1 }
 0x109   : > { %377 = vperm.xlu0 %1110, %v349_v41  }
 0x10c   : > { %392 = vperm.xlu1 %1111, %v352_v44  }
 0x10d   : > { %387 = vperm.xlu0 %1110, %v351_v45  }
 0x110   : > { %402 = vperm.xlu1 %1111, %v354_v48  }
 0x111   : > { %397 = vperm.xlu0 %1110, %v353_v49  }
 0x114   : > { %666 = vperm.xlu1 %1111, %v652_v52  }
 0x115   : > { %661 = vperm.xlu0 %1110, %v651_v53  }
 0x118   : > { %676 = vperm.xlu1 %1111, %v654_v54  }
 0x119   : > { %671 = vperm.xlu0 %1110, %v653_v55  }
 0x11c   : > { %686 = vperm.xlu1 %1111, %v656_v56  }
 0x11d   : > { %681 = vperm.xlu0 %1110, %v655_v57  }
 0x120   : > { %696 = vperm.xlu1 %1111, %v658_v58  }
 0x121   : > { %691 = vperm.xlu0 %1110, %v657_v59  }
 0x16e   : > { %v556_v5 = vpop.permute.xlu1 %555 }
 0x16f   : > { %v565_v6 = vmul.f32 %v946_v4, %v556_v5  ;;  %v554_v7 = vpop.permute.xlu0 %553 }
 0x170   : > { %v564_v8 = vmul.f32 %v946_v4, %v554_v7 }
 0x171   : > { %v592_v10 = vmul.f32 %v589_v61, %v565_v6 }
 0x172   : > { %v591_v11 = vmul.f32 %v584_v60, %v564_v8  ;;  %v569_v12 = vpop.permute.xlu1 %568 }
 0x173   : > { %v578_v14 = vmul.f32 %v947_v9, %v569_v12  ;;  %v567_v15 = vpop.permute.xlu0 %566  ;;  %v609_v18 = vadd.f32 %v607_v13, %v592_v10 }
 0x174   : > { %v577_v17 = vmul.f32 %v947_v9, %v567_v15  ;;  %v608_v20 = vadd.f32 %v606_v16, %v591_v11 }
 0x175   : > { %v624_v19 = vmul.f32 %v621_v0, %v578_v14 }
 0x176   : > { %v623_v21 = vmul.f32 %v616_v1, %v577_v17 }
 0x177   : > { %v626_v22 = vadd.f32 %v624_v19, %v609_v18 }
 0x178   : > { %v625_v23 = vadd.f32 %v623_v21, %v608_v20 }
 0x179   : > { %v640_v24 = vadd.f32 %v637_v2, %v626_v22 }
 0x17a   : > { %v639_v25 = vadd.f32 %v632_v3, %v625_v23 }
 0x17b   : > { %v642_v26 = vmax.f32 %v640_v24, 0.0 }
 0x17c   : > { %v641_v27 = vmax.f32 %v639_v25, 0.0 }
 0x17e   : > { %v1038_v28 = vpack.c.bf16 %v642_v26, %v641_v27 }
 0x180   : > { %1039 = vmatprep.subr.bf16.mxu0 %v1038_v28 }
 0x181   : > { %1041 = vmatpush3.bf16.msra.mxu0 %v1038_v28 }
 0x183   : > { %v373_v36 = vpop.permute.xlu1 %372 }
 0x184   : > { %1019 = vmatmul.mubr.msk.f32.vlgmr.msra.gmra.mrb[0].mxu0 %vm699_vm1, %v644_v29  ;;  %v368_v37 = vpop.permute.xlu0 %367  ;;  %v518_v55 = vadd.f32 %v1373_v38, %v373_v36 }
 0x185   : > { %1021 = vmatprep.mubr.msk.f32.mxu0 %vm699_vm1, %v645_v30  ;;  %v513_v57 = vadd.f32 %v1375_v39, %v368_v37 }
 0x187   : > { %v383_v40 = vpop.permute.xlu1 %382 }
 0x188   : > { %1022 = vmatmul.mubr.msk.f32.gmra.mrb[2].mxu0 %vm699_vm1, %v646_v31  ;;  %v378_v41 = vpop.permute.xlu0 %377  ;;  %v528_v61 = vadd.f32 %v1383_v42, %v383_v40 }
 0x189   : > { %1024 = vmatprep.mubr.msk.f32.mxu0 %vm699_vm1, %v647_v32  ;;  %v523_v0 = vadd.f32 %v1385_v43, %v378_v41 }
 0x18b   : > { %v393_v44 = vpop.permute.xlu1 %392 }
 0x18c   : > { %1025 = vmatmul.mubr.msk.f32.gmra.mrb[4].mxu0 %vm699_vm1, %v648_v33  ;;  %v388_v45 = vpop.permute.xlu0 %387  ;;  %v538_v39 = vadd.f32 %v1393_v46, %v393_v44 }
 0x18d   : > { %1027 = vmatprep.mubr.msk.f32.mxu0 %vm699_vm1, %v649_v34  ;;  %v533_v43 = vadd.f32 %v1395_v47, %v388_v45 }
 0x18f   : > { %v403_v48 = vpop.permute.xlu1 %402 }
 0x190   : > { %1028 = vmatmul.mubr.msk.f32.gmra.mrb[6].mxu0 %vm699_vm1, %v650_v35  ;;  %v398_v49 = vpop.permute.xlu0 %397  ;;  %v548_v15 = vadd.f32 %v1403_v50, %v403_v48 }
 0x191   : > { %v543_v47 = vadd.f32 %v1405_v51, %v398_v49 }
 0x193   : > { %v667_v52 = vpop.permute.xlu1 %666 }
 0x194   : > { %v662_v53 = vpop.permute.xlu0 %661  ;;  %v1043_v58 = vadd.f32 %v667_v52, %v518_v55 }
 0x195   : > { %v1046_v59 = vadd.f32 %v662_v53, %v513_v57 }
 0x197   : > { %v677_v54 = vpop.permute.xlu1 %676 }
 0x198   : > { %v672_v56 = vpop.permute.xlu0 %671  ;;  %v1049_v3 = vadd.f32 %v677_v54, %v528_v61 }
 0x199   : > { %v1052_v38 = vadd.f32 %v672_v56, %v523_v0 }
 0x19b   : > { %v687_v1 = vpop.permute.xlu1 %686 }
 0x19c   : > { %v682_v4 = vpop.permute.xlu0 %681  ;;  %v1055_v10 = vadd.f32 %v687_v1, %v538_v39 }
 0x19d   : > { %v1058_v12 = vadd.f32 %v682_v4, %v533_v43 }
 0x19f   : > { %v697_v13 = vpop.permute.xlu1 %696 }
 0x1a0   : > { %v692_v16 = vpop.permute.xlu0 %691  ;;  %v1061_v20 = vadd.f32 %v697_v13, %v548_v15 }
 0x1a1   : > { %v1064_v22 = vadd.f32 %v692_v16, %v543_v47 }
 0x257   : > { %v1020_v60 = vpop.f32.mrb[0].mxu0 }
 0x258   : > { %v1044_v62 = vadd.f32 %v1043_v58, %v1020_v60  ;;  %v790_v63 = vpop.f32.mrb[1].mxu0 }
 0x259   : > { %v1047_v2 = vadd.f32 %v1046_v59, %v790_v63 }
 0x25a   : > { %v838_v5 = vmax.f32 %v1044_v62, 0.0 }
 0x25b   : > { %v837_v6 = vmax.f32 %v1047_v2, 0.0  ;;  %v1023_v7 = vpop.f32.mrb[2].mxu0 }
 0x25c   : > { %846 = vst [vmem:[%s1475_s25 + $0x8] sm:$0xff] %v838_v5  ;;  %v1050_v42 = vadd.f32 %v1049_v3, %v1023_v7  ;;  %v800_v8 = vpop.f32.mrb[3].mxu0 }
 0x25d   : > { %845 = vst [vmem:[%s1475_s25] sm:$0xff] %v837_v6  ;;  %v1053_v9 = vadd.f32 %v1052_v38, %v800_v8 }
 0x25e   : > { %v840_v11 = vmax.f32 %v1050_v42, 0.0 }
 0x25f   : > { %v839_v14 = vmax.f32 %v1053_v9, 0.0  ;;  %v1026_v46 = vpop.f32.mrb[4].mxu0 }
 0x260   : > { %848 = vst [vmem:[%s1475_s25 + $0x18] sm:$0xff] %v840_v11  ;;  %v1056_v17 = vadd.f32 %v1055_v10, %v1026_v46  ;;  %v810_v18 = vpop.f32.mrb[5].mxu0 }
 0x261   : > { %847 = vst [vmem:[%s1475_s25 + $0x10] sm:$0xff] %v839_v14  ;;  %v1059_v19 = vadd.f32 %v1058_v12, %v810_v18 }
 0x262   : > { %v842_v21 = vmax.f32 %v1056_v17, 0.0 }
 0x263   : > { %v841_v23 = vmax.f32 %v1059_v19, 0.0  ;;  %v1029_v24 = vpop.f32.mrb[6].mxu0 }
 0x264   : > { %850 = vst [vmem:[%s1475_s25 + $0x28] sm:$0xff] %v842_v21  ;;  %v1062_v50 = vadd.f32 %v1061_v20, %v1029_v24  ;;  %v820_v25 = vpop.f32.mrb[7].mxu0 }
 0x265   : > { %849 = vst [vmem:[%s1475_s25 + $0x20] sm:$0xff] %v841_v23  ;;  %v1065_v26 = vadd.f32 %v1064_v22, %v820_v25 }
 0x266   : > { %v844_v27 = vmax.f32 %v1062_v50, 0.0 }
 0x267   : > { %v843_v51 = vmax.f32 %v1065_v26, 0.0 }
 0x268   : > { %852 = vst [vmem:[%s1475_s25 + $0x38] sm:$0xff] %v844_v27 }
 0x269   : > { %851 = vst [vmem:[%s1475_s25 + $0x30] sm:$0xff] %v843_v51 }
 0x26a   : > { %1125 = shalt.err (!%p1122_p3)
}
 0x26b   : > { %s1126_s24 = scalar_lea.hbm %s1491_s16, 1024  ;;  %s1130_s27 = scalar_lea.hbm %s1549_s9, 2048 }
 0x26c   : > { %p1127_p4 = scmp.ne.s32.totalorder %s1491_s16, %s1126_s24  ;;  %p1131_p9 = scmp.lt.u32.totalorder %s1491_s16, %s1549_s9 }
 0x26d   : > { %p1132_p10 = scmp.lt.u32.totalorder %s1130_s27, %s1126_s24  ;;  %p1134_p12 = scmp.lt.u32.totalorder %s1126_s24, %s1491_s16 }
 0x26e   : > { %p1128_p7 = pnand %p1127_p4, %p1270_p5 }
 0x26f   : > { %p1133_p11 = por %p1132_p10, %p1131_p9 }
 0x270   : > { %p1129_p8 = pneg %p1128_p7 }
 0x271   : > { %p1135_p13 = por %p1134_p12, %p1133_p11 }
 0x273   : > { %p1136_p0 = pnand %p1135_p13, %p1129_p8 }
 0x275   : > { %1139 = shalt.err (!%p1136_p0)
}
 0x276   : > { %s1180_s17 = smov 128   ;;  %s1181_s21 = smov 8  }
 0x277   : > { %1066 = dma.vmem_to_hbm [thread:$0]  (%p1270_p5), %s1493_s28, 1024, %s1491_s16, %s1499_s13, %s1180_s17, %s1180_s17, %s1181_s21  }
 0x278 PF: > { %p1072_p1 = scmp.ge.s32.totalorder %s1174_s12, 2  ;;  %s882_s22 = sand.u32 1, %s1162_s30  }
 0x279   : > { %s883_s23 = scalar_lea.sflag [#allocation3], %s882_s22 }
 0x27a   : > { %p1069_p2 = pnand %p1072_p1, %p1274_p6 }
 0x27c   : > { %1157 = dma.done.wait (!%p1069_p2), %s883_s23, 1024  }
 0x27d   : > { %1159 = vsyncadd (!%p1069_p2), %s883_s23, 4294966272  ;;  %p19_p3 = scmp.ge.s32.totalorder %s1257_s15, 4   ;;  %s1552_s30 = smov %s1166_s10 }
 0x27e   : > { %s1553_s10 = smov %s1170_s11  ;;  %s1554_s11 = smov %s1268_s18 }
 0x27f   : > { %s1555_s12 = smov %s1257_s15  ;;  %21 = sbr.rel (!%p19_p3) target bundleno = 3 (0x3), region = 93 }
 0x286   :  { %888 = vsyncpa [#allocation3], 1 }
 0x287   :  { %890 = vsyncpa [#allocation3 + $0x1], 1 }

</bundles_post_ra>
